<compile_context>
chip_gen: v5e
topology: v5e:2x2
jax: 0.10.0
libtpu: 0.0.40
codegen_flags: <defaults>
</compile_context>

<pallas_src>
import functools

import jax
import jax.numpy as jnp
from jax.experimental import pallas as pl
from jax.experimental.pallas import tpu as pltpu

LANE = 128
SUBLANE = 8


def _round_up(n, m):
    return ((n + m - 1) // m) * m


def residual_block_kernel(x_ref, w1_ref, w2_ref, b_ref, o_ref):
    # x_ref : (tm, D)  f32 tile of the batch (kept f32 for the residual add)
    # w1/w2 : (D, D)   weights in (in, out) layout, bf16 (default) or f32
    # b_ref : (2, D)   f32, row 0 = b1, row 1 = b2
    x = x_ref[...].astype(jnp.float32)
    mxu_dtype = w1_ref.dtype

    h = jnp.dot(x.astype(mxu_dtype), w1_ref[...],
                preferred_element_type=jnp.float32)
    h = jnp.tanh(h + b_ref[0:1, :])                       # EUP, f32

    out = jnp.dot(h.astype(mxu_dtype), w2_ref[...],
                  preferred_element_type=jnp.float32)
    out = out + b_ref[1:2, :]

    o_ref[...] = jnp.tanh(x + out).astype(o_ref.dtype)


def prepare_params(w1, b1, w2, b2, *, compute_dtype=jnp.bfloat16):
    """One-time parameter prep (do NOT call per forward pass).

    In : PyTorch layout W (out, in), b (out,).
    Out: W1, W2 as (D, D) in (in, out) layout cast to compute_dtype (bf16 by
         default: MXU-native on all generations, halves weight HBM/VMEM bytes),
         and b12 = stacked biases (2, D) in float32.
    """
    D = w1.shape[0]
    w1_t = jnp.asarray(w1).T.astype(compute_dtype)          # (in, out)
    w2_t = jnp.asarray(w2).T.astype(compute_dtype)
    b12 = jnp.stack([jnp.asarray(b1), jnp.asarray(b2)]).reshape(2, D)
    return w1_t, w2_t, b12.astype(jnp.float32)


@functools.partial(
    jax.jit, static_argnames=("tm", "out_dtype", "vmem_limit_bytes"))
def residual_block_fwd(x, w1_t, w2_t, b12, *, tm=512,
                       out_dtype=jnp.float32, vmem_limit_bytes=None):
    """x: (B, D) f32.  w1_t/w2_t/b12: outputs of prepare_params.  -> (B, D)."""
    B, D = x.shape
    assert w1_t.shape == (D, D) and w2_t.shape == (D, D) and b12.shape == (2, D)

    # Big batches get large (HBM-roofline-friendly) tiles; tiny batches avoid
    # padding a handful of rows up to tm.
    tm_eff = max(SUBLANE, min(tm, _round_up(B, SUBLANE)))
    # v7x: the "parallel" grid axis is sharded across its 2 TensorCores --
    # keep at least 2 balanced steps whenever the batch is big enough to split.
    if B > SUBLANE:
        tm_eff = min(tm_eff, _round_up(-(-B // 2), SUBLANE))

    grid = (pl.cdiv(B, tm_eff),)   # partial last block allowed; no host padding

    if vmem_limit_bytes is None:
        # Actual footprint (double-buffered I/O tiles + resident params) plus
        # headroom for Mosaic internal scratch; capped v7x-safely (< 64 MiB).
        w_bytes = 2 * D * D * jnp.dtype(w1_t.dtype).itemsize
        io_bytes = 2 * 2 * tm_eff * D * 4          # x + out tiles, 2 buffers
        b_bytes = 2 * 2 * D * 4
        vmem_limit_bytes = max(
            16 << 20, min(2 * (w_bytes + io_bytes + b_bytes) + (4 << 20),
                          48 << 20))

    out = pl.pallas_call(
        residual_block_kernel,
        out_shape=jax.ShapeDtypeStruct((B, D), out_dtype),
        grid_spec=pltpu.PrefetchScalarGridSpec(
            num_scalar_prefetch=0,
            grid=grid,
            in_specs=[
                pl.BlockSpec((tm_eff, D), lambda i: (i, 0)),   # x tile
                pl.BlockSpec((D, D), lambda i: (0, 0)),        # w1 (resident)
                pl.BlockSpec((D, D), lambda i: (0, 0)),        # w2 (resident)
                pl.BlockSpec((2, D), lambda i: (0, 0)),        # b1/b2 stacked
            ],
            out_specs=pl.BlockSpec((tm_eff, D), lambda i: (i, 0)),
        ),
        compiler_params=pltpu.CompilerParams(
            dimension_semantics=("parallel",),
            vmem_limit_bytes=vmem_limit_bytes,
        ),
    )(x, w1_t, w2_t, b12)
    return out


def residual_block_ref(x, w1, b1, w2, b2):
    h = jnp.tanh(x @ w1.T + b1)
    out = h @ w2.T + b2
    return jnp.tanh(x + out)


if __name__ == "__main__":
    # Small shapes consistent with the module; B chosen to exercise a partial
    # last batch block (no host-side pad/slice in the hot path).
    B, D = 20, 64
    key = jax.random.PRNGKey(0)
    kx, kw1, kb1, kw2, kb2 = jax.random.split(key, 5)

    bound = 1.0 / jnp.sqrt(D)
    x = jax.random.normal(kx, (B, D), dtype=jnp.float32)
    w1 = jax.random.uniform(kw1, (D, D), minval=-bound, maxval=bound, dtype=jnp.float32)
    b1 = jax.random.uniform(kb1, (D,), minval=-bound, maxval=bound, dtype=jnp.float32)
    w2 = jax.random.uniform(kw2, (D, D), minval=-bound, maxval=bound, dtype=jnp.float32)
    b2 = jax.random.uniform(kb2, (D,), minval=-bound, maxval=bound, dtype=jnp.float32)

    y_ref = residual_block_ref(x, w1, b1, w2, b2)

    # f32 weight path: matches the reference to tight tolerance.
    params_f32 = prepare_params(w1, b1, w2, b2, compute_dtype=jnp.float32)
    y = jax.block_until_ready(residual_block_fwd(x, *params_f32))
    assert y.shape == (B, D)
    assert jnp.allclose(y, y_ref, atol=1e-5, rtol=1e-5), "f32 mismatch vs reference"

    # Default bf16 weight path (MXU-native on all generations): bf16 operands,
    # f32 accumulation / bias / residual / tanh.
    params_bf16 = prepare_params(w1, b1, w2, b2)
    y16 = jax.block_until_ready(residual_block_fwd(x, *params_bf16))
    assert jnp.allclose(y16, y_ref, atol=3e-2, rtol=3e-2), "bf16 mismatch vs reference"

    print("KERNEL_OK")
</pallas_src>

<mosaic_0001>
module attributes {stable_mosaic.version = 11 : i64} {
  func.func @residual_block_kernel(%arg0: i32, %arg1: memref<16x64xf32, #tpu.memory_space<vmem>>, %arg2: memref<64x64xf32, #tpu.memory_space<vmem>>, %arg3: memref<64x64xf32, #tpu.memory_space<vmem>>, %arg4: memref<2x64xf32, #tpu.memory_space<vmem>>, %arg5: memref<16x64xf32, #tpu.memory_space<vmem>>) attributes {dimension_semantics = [#tpu.dimension_semantics<parallel>], iteration_bounds = array<i64: 2>, scalar_prefetch = 0 : i64, scratch_operands = 0 : i64, tpu.core_type = #tpu.core_type<tc>, window_params = [{transform_indices = @transform_0, window_bounds = array<i64: 16, 64>}, {pipeline_mode = #tpu.pipeline_mode<synchronous>, transform_indices = @transform_1, window_bounds = array<i64: 64, 64>}, {pipeline_mode = #tpu.pipeline_mode<synchronous>, transform_indices = @transform_2, window_bounds = array<i64: 64, 64>}, {pipeline_mode = #tpu.pipeline_mode<synchronous>, transform_indices = @transform_3, window_bounds = array<i64: 2, 64>}, {transform_indices = @transform_4, window_bounds = array<i64: 16, 64>}]} {
    %c0 = arith.constant 0 : index
    %c0_0 = arith.constant 0 : index
    %0 = vector.load %arg1[%c0, %c0_0] : memref<16x64xf32, #tpu.memory_space<vmem>>, vector<16x64xf32>
    %c0_1 = arith.constant 0 : index
    %c0_2 = arith.constant 0 : index
    %1 = vector.load %arg2[%c0_1, %c0_2] : memref<64x64xf32, #tpu.memory_space<vmem>>, vector<64x64xf32>
    %cst = arith.constant dense<0.000000e+00> : vector<16x64xf32>
    %2 = tpu.matmul %0, %1, %cst {dimension_numbers = #tpu.dot_dimension_numbers<[1], [0], [0], [1], [0, 0, 1, 1], [], []>} : vector<16x64xf32>, vector<64x64xf32>, vector<16x64xf32> -> vector<16x64xf32>
    %c0_3 = arith.constant 0 : index
    %c0_4 = arith.constant 0 : index
    %3 = vector.load %arg4[%c0_3, %c0_4] : memref<2x64xf32, #tpu.memory_space<vmem>>, vector<1x64xf32>
    %4 = vector.broadcast %3 : vector<1x64xf32> to vector<16x64xf32>
    %5 = arith.addf %2, %4 : vector<16x64xf32>
    %6 = math.tanh %5 : vector<16x64xf32>
    %c0_5 = arith.constant 0 : index
    %c0_6 = arith.constant 0 : index
    %7 = vector.load %arg3[%c0_5, %c0_6] : memref<64x64xf32, #tpu.memory_space<vmem>>, vector<64x64xf32>
    %cst_7 = arith.constant dense<0.000000e+00> : vector<16x64xf32>
    %8 = tpu.matmul %6, %7, %cst_7 {dimension_numbers = #tpu.dot_dimension_numbers<[1], [0], [0], [1], [0, 0, 1, 1], [], []>} : vector<16x64xf32>, vector<64x64xf32>, vector<16x64xf32> -> vector<16x64xf32>
    %c1 = arith.constant 1 : index
    %c0_8 = arith.constant 0 : index
    %9 = vector.load %arg4[%c1, %c0_8] : memref<2x64xf32, #tpu.memory_space<vmem>>, vector<1x64xf32>
    %10 = vector.broadcast %9 : vector<1x64xf32> to vector<16x64xf32>
    %11 = arith.addf %8, %10 : vector<16x64xf32>
    %12 = arith.addf %0, %11 : vector<16x64xf32>
    %13 = math.tanh %12 : vector<16x64xf32>
    %c0_9 = arith.constant 0 : index
    %c0_10 = arith.constant 0 : index
    %14 = vector.load %arg5[%c0_9, %c0_10] : memref<16x64xf32, #tpu.memory_space<vmem>>, vector<16x64xf32>
    tpu.vector_store %arg5[%c0_9, %c0_10], %13 {strides = array<i32>} : memref<16x64xf32, #tpu.memory_space<vmem>>, vector<16x64xf32>,
    return
  }
  func.func @transform_0(%arg0: i32) -> (i32, i32) {
    %c0_i32 = arith.constant 0 : i32
    %c0_i32_0 = arith.constant 0 : i32
    return %arg0, %c0_i32 : i32, i32
  }
  func.func @transform_1(%arg0: i32) -> (i32, i32) {
    %c0_i32 = arith.constant 0 : i32
    %c0_i32_0 = arith.constant 0 : i32
    %c0_i32_1 = arith.constant 0 : i32
    return %c0_i32, %c0_i32_0 : i32, i32
  }
  func.func @transform_2(%arg0: i32) -> (i32, i32) {
    %c0_i32 = arith.constant 0 : i32
    %c0_i32_0 = arith.constant 0 : i32
    %c0_i32_1 = arith.constant 0 : i32
    return %c0_i32, %c0_i32_0 : i32, i32
  }
  func.func @transform_3(%arg0: i32) -> (i32, i32) {
    %c0_i32 = arith.constant 0 : i32
    %c0_i32_0 = arith.constant 0 : i32
    %c0_i32_1 = arith.constant 0 : i32
    return %c0_i32, %c0_i32_0 : i32, i32
  }
  func.func @transform_4(%arg0: i32) -> (i32, i32) {
    %c0_i32 = arith.constant 0 : i32
    %c0_i32_0 = arith.constant 0 : i32
    return %arg0, %c0_i32 : i32, i32
  }
}

</mosaic_0001>

<bundles_post_ra>
// kernel: residual_block_fwd.1
= control target key start
LH: loop header
LB: loop body
LE: loop exit
PB: predicated region body
PF: predicated region fallthrough
CT: control target
= control target key end

     0   :  { %9 = vsyncpa [#allocation3], 0  ;;  %s1034_s0 = inlined_call_operand.hbm [shape: f32[20,64], index: 0, kind: input, shape index: {}]   ;;  %s1035_s1 = inlined_call_operand.hbm [shape: f32[64,64], index: 1, kind: input, shape index: {}]   ;;  %s1036_s2 = inlined_call_operand.hbm [shape: f32[64,64], index: 2, kind: input, shape index: {}]   ;;  %s1037_s3 = inlined_call_operand.vmem [shape: f32[2,64], index: 3, kind: input, shape index: {}]   ;;  %s1038_s4 = inlined_call_operand.hbm [shape: f32[20,64], index: 4, kind: output, shape index: {}]  }
   0x1   :  { %11 = vsyncpa [#allocation3 + $0x1], 0 }
   0x2   :  { %12 = vsyncpa [#allocation6], 0 }
   0x3   :  { %13 = vsyncpa [#allocation4], 0 }
   0x4   :  { %15 = vsyncpa [#allocation4 + $0x1], 0  ;;  %s813_s15 = smov 0   ;;  %s815_s16 = smov 0  }
   0x5   :  { %s817_s17 = smov 0   ;;  %s819_s18 = smov 0  }
   0x6 LB: > { %s834_s19 = sadd.s32 4294967295, %s776_s18   ;;  %s472_s20 = sadd.s32 4294967294, %s776_s18   ;;  %s776_s18 = sphi %s819_s18, %s1057_s18   ;;  %s772_s17 = sphi %s817_s17, %s1056_s17   ;;  %s768_s16 = sphi %s815_s16, %s1055_s16   ;;  %s764_s15 = sphi %s813_s15, %s1054_s15  }
   0x7   : > { %s838_s21 = sadd.s32 1, %s776_s18   ;;  %s28_s22 = sadd.s32 1, %s772_s17 }
   0x8   : > { %s25_s23 = ssub.s32 %s776_s18, %s838_s21  ;;  %p35_p0 = scmp.ne.s32.totalorder %s772_s17, %s768_s16 }
   0x9   : > { %p26_p1 = scmp.eq.s32.totalorder %s25_s23, 0  ;;  %p36_p2 = scmp.eq.s32.totalorder %s776_s18, 0 }
   0xa   : > { %p41_p3 = scmp.ne.s32.totalorder %s768_s16, %s764_s15  ;;  %p1041_p4 = scmp.eq.s32.totalorder %s834_s19, 0 }
   0xb   : > { %s850_s24 = scalar_select %p26_p1, %s772_s17, %s28_s22  }
   0xc   : > { %p852_p5 = por %p36_p2, %p35_p0  ;;  %p858_p6 = por %p1041_p4, %p41_p3 }
   0xd   : > { %p128_p7 = scmp.eq.s32.totalorder %s834_s19, 1  ;;  %p134_p8 = scmp.eq.s32.totalorder %s472_s20, 1 }
   0xe   : > { %p473_p9 = scmp.ge.s32.totalorder %s776_s18, 1  ;;  %p141_p10 = scmp.lt.s32.totalorder %s776_s18, 3 }
   0xf   : > { %p865_p11 = por %p128_p7, %p35_p0  ;;  %p869_p12 = por %p134_p8, %p41_p3 }
  0x10   : > { %p873_p13 = pnand %p473_p9, %p141_p10  ;;  %s152_s6 = sshll.u32 %s1035_s1, 4  ;;  %s153_s6 = int_to_ptr.hbm [resolvable:$true] %s152_s6 }
  0x11   : > { %s1045_s28 = scalar_select %p869_p12, 1, 0 }
  0x12   : > { %p530_p1 = pneg %p873_p13  ;;  %s778_s7 = smov [#allocation5]  }
  0x13   : > { %s154_s8 = sshll.u32 %s778_s7, 4  ;;  %s166_s11 = sshll.u32 %s1036_s2, 4  ;;  %s155_s8 = int_to_ptr.vmem [resolvable:$true] %s154_s8  ;;  %s167_s11 = int_to_ptr.hbm [resolvable:$true] %s166_s11 }
  0x14   : > { %p531_p0 = pnand %p530_p1, %p1041_p4  ;;  %s779_s12 = smov 128  }
  0x15   : > { %s780_s13 = smov 8   ;;  %s781_s14 = smov [#allocation7]  }
  0x16   : > { %533 = dma.hbm_to_vmem [thread:$0]  (!%p531_p0), %s153_s6, 1024, %s155_s8, [#allocation6], %s779_s12, %s779_s12, %s780_s13  }
  0x17   : > { %s168_s20 = sshll.u32 %s781_s14, 4  ;;  %p1040_p2 = scmp.ge.s32.totalorder %s776_s18, 2  ;;  %s169_s20 = int_to_ptr.vmem [resolvable:$true] %s168_s20 }
  0x18   : > { %536 = dma.hbm_to_vmem [thread:$0]  (!%p531_p0), %s167_s11, 1024, %s169_s20, [#allocation6], %s779_s12, %s779_s12, %s780_s13  }
  0x19   : > { %181 = sbr.rel (%p1040_p2) target bundleno = 67 (0x43), region = 28 }
  0x1e   : > { %184 = sbr.rel (!%p852_p5) target bundleno = 67 (0x43), region = 32  ;;  %s185_s22 = sand.u32 (%p852_p5), 1, %s772_s17  }
  0x1f   : > { %s478_s23 = sshll.u32 (%p852_p5), %s776_s18, 1  ;;  %s477_s30 = sshll.u32 (%p852_p5), %s185_s22, 4 }
  0x20   : > { %s191_s5 = ssub.s32 (%p852_p5), 3, %s478_s23  ;;  %s897_s9 = scalar_lea.sflag (%p852_p5), [#allocation3], %s185_s22 }
  0x21   : > { %p192_p3 = scmp.lt.s32.totalorder (%p852_p5), %s191_s5, 2  ;;  %s189_s10 = scalar_lea.vmem (%p852_p5), [#allocation2], %s477_s30 }
  0x23   : > { %s1059_s5 = smov (!%p192_p3, %s191_s5), 2 }
  0x24   : > { %s479_s6 = sshll.u32 %s1059_s5, 3 }
  0x25   : > { %s195_s7 = ssub.s32 16, %s479_s6 }
  0x26   : > { %s196_s8 = sshll.u32 %s195_s7, 4 }
  0x27   : > { %197 = vsyncadd %s897_s9, %s196_s8  ;;  %p900_p5 = scmp.ne.s32.totalorder %s479_s6, 0  ;;  %s502_s11 = sshll.u32 %s776_s18, 4 }
  0x28   : > { %s200_s14 = scalar_lea.hbm %s1034_s0, %s502_s11  ;;  %s908_s20 = sshll.u32 %s189_s10, 4  ;;  %s205_s20 = int_to_ptr.vmem [resolvable:$true] %s908_s20 }
  0x29   : > { %s202_s22 = sshll.u32 %s200_s14, 4  ;;  %s1039_s23 = sshll.u32 %s1059_s5, 7  ;;  %s911_s22 = int_to_ptr.hbm [resolvable:$true] %s202_s22 }
  0x2a   : > { %s656_s30 = sshra.s32 %s911_s22, 4  ;;  %s658_s6 = sshrl.u32 %s1039_s23, 4  ;;  %s657_s30 = int_to_ptr.hbm [resolvable:$true] %s656_s30 }
  0x2b   : > { %s663_s7 = scalar_lea.hbm %s657_s30, %s658_s6  ;;  %s667_s10 = scalar_lea.hbm %s1034_s0, 24 }
  0x2c   : > { %p664_p7 = scmp.ne.s32.totalorder %s657_s30, %s663_s7  ;;  %p668_p10 = scmp.lt.s32.totalorder %s657_s30, %s1034_s0 }
  0x2d   : > { %p669_p1 = scmp.lt.s32.totalorder %s667_s10, %s663_s7 }
  0x2e   : > { %p665_p8 = pnand %p664_p7, %p900_p5 }
  0x2f   : > { %p670_p0 = por %p669_p1, %p668_p10 }
  0x30   : > { %p666_p9 = pneg %p665_p8 }
  0x32   : > { %p671_p3 = pnand %p670_p0, %p666_p9 }
  0x34   : > { %674 = shalt.err (!%p671_p3)
}
  0x35   : > { %s675_s14 = sshra.s32 %s205_s20, 4  ;;  %s782_s8 = smov [#allocation2]   ;;  %s676_s14 = int_to_ptr.vmem [resolvable:$true] %s675_s14 }
  0x36   : > { %s682_s23 = scalar_lea.vmem %s676_s14, %s658_s6  ;;  %s686_s11 = scalar_lea.vmem %s782_s8, 32 }
  0x37   : > { %p683_p7 = scmp.ne.s32.totalorder %s676_s14, %s682_s23  ;;  %p688_p4 = scmp.lt.s32.totalorder %s686_s11, %s682_s23 }
  0x39   : > { %p684_p8 = pnand %p683_p7, %p900_p5 }
  0x3b   : > { %p685_p2 = pneg %p684_p8 }
  0x3d   : > { %p690_p12 = pnand %p688_p4, %p685_p2 }
  0x3f   : > { %693 = shalt.err (!%p690_p12)
}
  0x40   : > { %s783_s30 = smov 128   ;;  %s784_s7 = smov 8  }
  0x41   : > { %s1048_s10 = sshll.u32 %s1059_s5, 7 }
  0x42   : > { %210 = dma.hbm_to_vmem [thread:$0]  (%p900_p5), %s911_s22, %s1048_s10, %s205_s20, %s897_s9, %s783_s30, %s783_s30, %s784_s7  }
  0x43 PF: > { %216 = sbr.rel (%p873_p13) target bundleno = 408 (0x198), region = 36  ;;  %s940_s23 = sand.u32 (!%p873_p13), 1, %s768_s16  }
  0x44   : > { %s485_s6 = sshll.u32 (!%p873_p13), %s940_s23, 4  ;;  %s219_s12 = scalar_lea.sflag (!%p873_p13), [#allocation3], %s940_s23 }
  0x45   : > { %s946_s13 = scalar_lea.vmem (!%p873_p13), [#allocation2], %s485_s6 }
  0x48   : > { %751 = dma.done.wait (%p858_p6), %s219_s12, 256  }
  0x49   : > { %753 = vsyncadd (%p858_p6), %s219_s12, 4294967040  ;;  %p1049_p4 = scmp.eq.s32.totalorder %s834_s19, 0 }
  0x4b   : > { %755 = dma.done.wait (%p1049_p4), [#allocation6], 2048   ;;  %p1050_p12 = pmov %p1049_p4 }
  0x4c   : > { %v277_v0 = vld [vmem:[#allocation5 + $0x38] sm:$0xff]  ;;  %v276_v1 = vld [vmem:[#allocation5 + $0x30] sm:$0xff]  ;;  %v275_v2 = vld [vmem:[#allocation5 + $0x28] sm:$0xff]  ;;  %vm280_vm0 = vcmask 523264   ;;  %s257_s25 = scalar_lea.vmem [#allocation8], %s485_s6  ;;  %s358_s20 = scalar_lea.sflag [#allocation4], %s940_s23 }
  0x4d   : > { %757 = vsyncadd (%p1050_p12), [#allocation6], 4294965248  ;;  %504 = vmatpush.msra.mxu2 %v277_v0  ;;  %295 = vmatpush.msra.mxu0 %v277_v0  ;;  %v319_v3 = vld [vmem:[#allocation7 + $0x38] sm:$0xff]  ;;  %v318_v4 = vld [vmem:[#allocation7 + $0x30] sm:$0xff]  ;;  %s494_s22 = sshll.u32 (%p865_p11), %s834_s19, 1 }
  0x4e   : > { %v274_v5 = vld [vmem:[#allocation5 + $0x20] sm:$0xff]  ;;  %512 = vmatpush.msra.mxu3 %v319_v3  ;;  %336 = vmatpush.msra.mxu1 %v319_v3  ;;  %v317_v6 = vld [vmem:[#allocation7 + $0x28] sm:$0xff]  ;;  %v273_v7 = vld [vmem:[#allocation5 + $0x18] sm:$0xff]  ;;  %s366_s14 = ssub.s32 (%p865_p11), 3, %s494_s22 }
  0x4f   : > { %505 = vmatpush.msra.mxu2 %v276_v1  ;;  %296 = vmatpush.msra.mxu0 %v276_v1  ;;  %v272_v8 = vld [vmem:[#allocation5 + $0x10] sm:$0xff]  ;;  %v271_v9 = vld [vmem:[#allocation5 + $0x8] sm:$0xff]  ;;  %v270_v10 = vld [vmem:[#allocation5] sm:$0xff]  ;;  %p367_p6 = scmp.lt.s32.totalorder (%p865_p11), %s366_s14, 2 }
  0x50   : > { %513 = vmatpush.msra.mxu3 %v318_v4  ;;  %337 = vmatpush.msra.mxu1 %v318_v4  ;;  %v269_v11 = vld [vmem:[%s946_s13 + $0x8] sm:$0xff]  ;;  %v268_v12 = vld [vmem:[%s946_s13] sm:$0xff] }
  0x51   : > { %506 = vmatpush.msra.mxu2 %v275_v2  ;;  %297 = vmatpush.msra.mxu0 %v275_v2  ;;  %v316_v13 = vld [vmem:[#allocation7 + $0x20] sm:$0xff]  ;;  %v315_v14 = vld [vmem:[#allocation7 + $0x18] sm:$0xff]  ;;  %v314_v15 = vld [vmem:[#allocation7 + $0x10] sm:$0xff] }
  0x52   : > { %514 = vmatpush.msra.mxu3 %v317_v6  ;;  %338 = vmatpush.msra.mxu1 %v317_v6  ;;  %v313_v16 = vld [vmem:[#allocation7 + $0x8] sm:$0xff]  ;;  %v312_v17 = vld [vmem:[#allocation7] sm:$0xff] }
  0x53   : > { %507 = vmatpush.msra.mxu2 %v274_v5  ;;  %298 = vmatpush.msra.mxu0 %v274_v5  ;;  %v586_v18 = vld [vmem:[%s1037_s3] ss:$0 sm:$0xff]  ;;  %v587_v25 = vld [vmem:[%s1037_s3 + $0x1] ss:$0 sm:$0xff] }
  0x54   : > { %515 = vmatpush.msra.mxu3 %v316_v13  ;;  %339 = vmatpush.msra.mxu1 %v316_v13 }
  0x55   : > { %508 = vmatpush.msra.mxu2 %v273_v7  ;;  %299 = vmatpush.msra.mxu0 %v273_v7 }
  0x56   : > { %516 = vmatpush.msra.mxu3 %v315_v14  ;;  %340 = vmatpush.msra.mxu1 %v315_v14 }
  0x57   : > { %509 = vmatpush.msra.mxu2 %v272_v8  ;;  %300 = vmatpush.msra.mxu0 %v272_v8 }
  0x58   : > { %517 = vmatpush.msra.mxu3 %v314_v15  ;;  %341 = vmatpush.msra.mxu1 %v314_v15 }
  0x59   : > { %510 = vmatpush.msra.mxu2 %v271_v9  ;;  %301 = vmatpush.msra.mxu0 %v271_v9 }
  0x5a   : > { %518 = vmatpush.msra.mxu3 %v313_v16  ;;  %342 = vmatpush.msra.mxu1 %v313_v16 }
  0x5b   : > { %511 = vmatpush.msra.mxu2 %v270_v10  ;;  %302 = vmatpush.msra.mxu0 %v270_v10 }
  0x5c   : > { %490 = vmatmul.msk.f32.vlgmr.msra.gmra.mxu2 %vm280_vm0, %v269_v11  ;;  %489 = vmatmul.msk.f32.vlgmr.msra.gmra.mxu0 %vm280_vm0, %v268_v12 }
  0x5d   : > { %519 = vmatpush.msra.mxu3 %v312_v17  ;;  %343 = vmatpush.msra.mxu1 %v312_v17 }
  0xd9   : > { %v304_v19 = vpop.f32.mrf.mxu0 }
  0xda   : > { %v305_v20 = vadd.f32 %v586_v18, %v304_v19 }
  0xdc   : > { %588 = vtanh.f32 %v305_v20 }
  0xdf   : > { %v307_v21 = vpop.f32.mrf.mxu2 }
  0xe0   : > { %v308_v22 = vadd.f32 %v586_v18, %v307_v21 }
  0xe2   : > { %v589_v23 = vpop.eup %588  ;;  %590 = vtanh.f32 %v308_v22 }
  0xe3   : > { %491 = vmatmul.msk.f32.vlgmr.msra.gmra.mxu1 %vm280_vm0, %v589_v23 }
  0xe8   : > { %v591_v24 = vpop.eup %590 }
  0xe9   : > { %492 = vmatmul.msk.f32.vlgmr.msra.gmra.mxu3 %vm280_vm0, %v591_v24 }
 0x160   : > { %v345_v26 = vpop.f32.mrf.mxu1 }
 0x161   : > { %v346_v27 = vadd.f32 %v587_v25, %v345_v26 }
 0x163   : > { %v351_v28 = vadd.f32 %v346_v27, %v268_v12 }
 0x165   : > { %592 = vtanh.f32 %v351_v28 }
 0x16b   : > { %v593_v29 = vpop.eup %592 }
 0x16c   : > { %355 = vst.msk [vmem:[%s257_s25] sm:$0xff] %vm280_vm0, %v593_v29  ;;  %v348_v30 = vpop.f32.mrf.mxu3 }
 0x16d   : > { %v349_v31 = vadd.f32 %v587_v25, %v348_v30 }
 0x16f   : > { %v352_v32 = vadd.f32 %v349_v31, %v269_v11 }
 0x171   : > { %594 = vtanh.f32 %v352_v32 }
 0x174   : > { %364 = sbr.rel (!%p865_p11) target bundleno = 408 (0x198), region = 52 }
 0x177   : > { %v595_v33 = vpop.eup %594 }
 0x178   : > { %356 = vst.msk [vmem:[%s257_s25 + $0x8] sm:$0xff] %vm280_vm0, %v595_v33 }
 0x179   : > { %s1061_s14 = smov (!%p367_p6, %s366_s14), 2 }
 0x17a   : > { %s495_s8 = sshll.u32 %s1061_s14, 3 }
 0x17b   : > { %s370_s11 = ssub.s32 16, %s495_s8 }
 0x17c   : > { %s371_s30 = sshll.u32 %s370_s11, 4 }
 0x17d   : > { %372 = vsyncadd %s358_s20, %s371_s30  ;;  %p981_p13 = scmp.ne.s32.totalorder %s495_s8, 0  ;;  %s503_s27 = sshll.u32 %s834_s19, 4 }
 0x17e   : > { %s375_s12 = scalar_lea.hbm %s1038_s4, %s503_s27  ;;  %s377_s13 = sshll.u32 %s257_s25, 4  ;;  %s989_s13 = int_to_ptr.vmem [resolvable:$true] %s377_s13 }
 0x17f   : > { %s379_s26 = sshll.u32 %s375_s12, 4  ;;  %s499_s29 = sshll.u32 %s1061_s14, 7  ;;  %s991_s26 = int_to_ptr.hbm [resolvable:$true] %s379_s26 }
 0x180   : > { %s695_s5 = sshra.s32 %s989_s13, 4  ;;  %s697_s9 = sshrl.u32 %s499_s29, 4  ;;  %s696_s5 = int_to_ptr.vmem [resolvable:$true] %s695_s5 }
 0x181   : > { %s702_s22 = scalar_lea.vmem %s696_s5, %s697_s9  ;;  %s785_s19 = smov [#allocation8]  }
 0x182   : > { %p703_p11 = scmp.ne.s32.totalorder %s696_s5, %s702_s22  ;;  %s706_s8 = scalar_lea.vmem %s785_s19, 32 }
 0x183   : > { %p708_p9 = scmp.lt.s32.totalorder %s706_s8, %s702_s22 }
 0x184   : > { %p704_p2 = pnand %p703_p11, %p981_p13 }
 0x186   : > { %p705_p5 = pneg %p704_p2 }
 0x188   : > { %p710_p10 = pnand %p708_p9, %p705_p5 }
 0x18a   : > { %713 = shalt.err (!%p710_p10)
}
 0x18b   : > { %s714_s25 = sshra.s32 %s991_s26, 4  ;;  %s725_s10 = scalar_lea.hbm %s1038_s4, 24  ;;  %s715_s25 = int_to_ptr.hbm [resolvable:$true] %s714_s25 }
 0x18c   : > { %s721_s11 = scalar_lea.hbm %s715_s25, %s697_s9  ;;  %p726_p7 = scmp.lt.s32.totalorder %s715_s25, %s1038_s4 }
 0x18d   : > { %p722_p1 = scmp.ne.s32.totalorder %s715_s25, %s721_s11  ;;  %p727_p8 = scmp.lt.s32.totalorder %s725_s10, %s721_s11 }
 0x18f   : > { %p723_p0 = pnand %p722_p1, %p981_p13  ;;  %p728_p4 = por %p727_p8, %p726_p7 }
 0x191   : > { %p724_p3 = pneg %p723_p0 }
 0x193   : > { %p729_p12 = pnand %p728_p4, %p724_p3 }
 0x195   : > { %732 = shalt.err (!%p729_p12)
}
 0x196   : > { %s786_s5 = smov 128   ;;  %s787_s9 = smov 8  }
 0x197   : > { %385 = dma.vmem_to_hbm [thread:$0]  (%p981_p13), %s989_s13, %s499_s29, %s991_s26, %s358_s20, %s786_s5, %s786_s5, %s787_s9  }
 0x198 PF: > { %s394_s22 = sand.u32 1, %s764_s15   ;;  %p1052_p6 = scmp.ne.s32.totalorder %s1045_s28, 0 }
 0x199   : > { %p1053_p11 = scmp.ge.s32.totalorder %s776_s18, 2  ;;  %s395_s19 = scalar_lea.sflag [#allocation4], %s394_s22 }
 0x19b   : > { %p538_p2 = pnand %p1053_p11, %p1052_p6 }
 0x19d   : > { %p539_p5 = pneg %p538_p2 }
 0x19f   : > { %759 = dma.done.wait (%p539_p5), %s395_s19, 256  }
 0x1a0   : > { %761 = vsyncadd (%p539_p5), %s395_s19, 4294967040  ;;  %p18_p9 = scmp.ge.s32.totalorder %s838_s21, 4   ;;  %s1054_s15 = smov %s768_s16 }
 0x1a1   : > { %s1055_s16 = smov %s772_s17  ;;  %s1056_s17 = smov %s850_s24 }
 0x1a2   : > { %s1057_s18 = smov %s838_s21  ;;  %20 = sbr.rel (!%p18_p9) target bundleno = 6 (0x6), region = 89 }
 0x1a7   :  { %401 = vsyncpa [#allocation3], 1 }
 0x1a8   :  { %403 = vsyncpa [#allocation3 + $0x1], 1 }
 0x1a9   :  { %404 = vsyncpa [#allocation6], 1 }
 0x1aa   :  { %405 = vsyncpa [#allocation4], 1 }
 0x1ab   :  { %407 = vsyncpa [#allocation4 + $0x1], 1 }

</bundles_post_ra>
